<compile_context>
chip_gen: v7x
topology: tpu7x:2x2x1
jax: 0.10.0
libtpu: 0.0.40
codegen_flags: <defaults>
</compile_context>

<pallas_src>
import math

import jax
import jax.numpy as jnp
from jax.experimental import pallas as pl
from jax.experimental.pallas import tpu as pltpu


def _make_self_info_kernel(num_channels: int):
    # out = -p * log2(p) / log2(C) = p * ((m + ln_s) - x) * scale
    # NOTE: C == 1 gives log2(C) == 0, same division-by-zero behavior as the
    # PyTorch source.
    scale = 1.0 / (math.log(2.0) * math.log2(num_channels))

    def kernel(x_ref, o_ref):
        # Block: (1, C, HW_TILE). Softmax over axis 1 (channels).
        x = x_ref[...].astype(jnp.float32)

        m = jnp.max(x, axis=1, keepdims=True)           # (1, 1, T)
        e = jnp.exp(x - m)                               # (1, C, T)  (EUP)
        s = jnp.sum(e, axis=1, keepdims=True)            # (1, 1, T)  (XLU/VPU)

        # One approximate reciprocal per column + one Newton step (VPU) to
        # restore fp32 accuracy; avoids C per-column EUP divides.
        inv_s = pl.reciprocal(s, approx=True)            # (1, 1, T)
        inv_s = inv_s * (2.0 - s * inv_s)

        ln_s = jnp.log(s)                                # (1, 1, T)  (EUP, O(T))
        base = m + ln_s                                  # (1, 1, T), hoisted

        p = e * inv_s                                    # (1, C, T)
        out = p * (base - x) * scale                     # single folded scale

        o_ref[...] = out.astype(o_ref.dtype)

    return kernel


def _choose_hw_tile(hw: int, num_channels: int, budget_bytes: int = 512 * 1024) -> int:
    """Pick a lane tile: multiple of 128, f32 (C, tile) temp <= ~budget_bytes."""
    hw_128 = ((hw + 127) // 128) * 128
    tile = (budget_bytes // (4 * num_channels)) // 128 * 128
    tile = max(128, tile)
    return min(tile, hw_128)


def self_information(x: jax.Array, eps: float = 1e-30) -> jax.Array:
    """x: (B, C, H, W) NCHW. Returns same shape / dtype.

    `eps` is kept for interface parity; the log-sum-exp formulation makes it
    unnecessary (results match the eps'd reference within fp32 tolerance).
    """
    del eps
    B, C, H, W = x.shape
    hw = H * W
    out_dtype = x.dtype

    hw_tile = _choose_hw_tile(hw, C)
    hw_padded = ((hw + hw_tile - 1) // hw_tile) * hw_tile

    x2 = x.reshape(B, C, hw)
    if hw_padded != hw:
        # Pad the flattened spatial axis so every block is lane-dense
        # (unmasked vector stores). Padded columns are dropped afterwards.
        x2 = jnp.pad(x2, ((0, 0), (0, 0), (0, hw_padded - hw)))

    grid = (B, hw_padded // hw_tile)
    kernel = _make_self_info_kernel(C)

    out = pl.pallas_call(
        kernel,
        out_shape=jax.ShapeDtypeStruct((B, C, hw_padded), out_dtype),
        grid_spec=pltpu.PrefetchScalarGridSpec(
            num_scalar_prefetch=0,
            grid=grid,
            in_specs=[pl.BlockSpec((1, C, hw_tile), lambda b, t: (b, 0, t))],
            out_specs=pl.BlockSpec((1, C, hw_tile), lambda b, t: (b, 0, t)),
        ),
        compiler_params=pltpu.CompilerParams(
            dimension_semantics=("parallel", "parallel"),
        ),
    )(x2)

    if hw_padded != hw:
        out = out[:, :, :hw]
    return out.reshape(B, C, H, W)


def _reference(x, eps=1e-30):
    p = jax.nn.softmax(x.astype(jnp.float32), axis=1)
    return (-p * (jnp.log(p + eps) / jnp.log(2.0)) / math.log2(x.shape[1])).astype(x.dtype)


if __name__ == "__main__":
    key = jax.random.PRNGKey(0)

    # Case 1: original small shape (H*W already a multiple of 128).
    x = jax.random.normal(key, (2, 4, 16, 16), dtype=jnp.float32)
    out = jax.block_until_ready(self_information(x))
    ref = _reference(x)
    assert out.shape == x.shape and out.dtype == x.dtype
    assert jnp.allclose(out, ref, atol=1e-5, rtol=1e-4)

    # Case 2: ragged spatial size (exercises the lane-padding path).
    k2 = jax.random.PRNGKey(1)
    x2 = jax.random.normal(k2, (2, 8, 9, 11), dtype=jnp.float32)
    out2 = jax.block_until_ready(self_information(x2))
    ref2 = _reference(x2)
    assert out2.shape == x2.shape and out2.dtype == x2.dtype
    assert jnp.allclose(out2, ref2, atol=1e-5, rtol=1e-4)

    print("KERNEL_OK")
</pallas_src>

<mosaic_0001>
module attributes {stable_mosaic.version = 11 : i64} {
  func.func @kernel(%arg0: i32, %arg1: i32, %arg2: memref<1x4x256xf32, #tpu.memory_space<vmem>>, %arg3: memref<1x4x256xf32, #tpu.memory_space<vmem>>) attributes {dimension_semantics = [#tpu.dimension_semantics<parallel>, #tpu.dimension_semantics<parallel>], iteration_bounds = array<i64: 2, 1>, scalar_prefetch = 0 : i64, scratch_operands = 0 : i64, tpu.core_type = #tpu.core_type<tc>, window_params = [{transform_indices = @transform_0, window_bounds = array<i64: 1, 4, 256>}, {transform_indices = @transform_1, window_bounds = array<i64: 1, 4, 256>}]} {
    %c0 = arith.constant 0 : index
    %c0_0 = arith.constant 0 : index
    %c0_1 = arith.constant 0 : index
    %0 = vector.load %arg2[%c0, %c0_0, %c0_1] : memref<1x4x256xf32, #tpu.memory_space<vmem>>, vector<1x4x256xf32>
    %cst = arith.constant dense<0xFF800000> : vector<1x256xf32>
    %1 = vector.multi_reduction <maximumf>, %0, %cst [1] : vector<1x4x256xf32> to vector<1x256xf32>
    %2 = vector.shape_cast %1 : vector<1x256xf32> to vector<1x1x256xf32>
    %3 = vector.broadcast %2 : vector<1x1x256xf32> to vector<1x4x256xf32>
    %4 = arith.subf %0, %3 : vector<1x4x256xf32>
    %5 = math.exp %4 : vector<1x4x256xf32>
    %cst_2 = arith.constant dense<0.000000e+00> : vector<1x256xf32>
    %6 = vector.multi_reduction <add>, %5, %cst_2 [1] : vector<1x4x256xf32> to vector<1x256xf32>
    %7 = vector.shape_cast %6 : vector<1x256xf32> to vector<1x1x256xf32>
    %8 = tpu.reciprocal %7 {approx = true} : vector<1x1x256xf32> -> vector<1x1x256xf32>
    %9 = arith.mulf %7, %8 : vector<1x1x256xf32>
    %cst_3 = arith.constant 2.000000e+00 : f32
    %10 = vector.broadcast %cst_3 : f32 to vector<1x1x256xf32>
    %11 = arith.subf %10, %9 : vector<1x1x256xf32>
    %12 = arith.mulf %8, %11 : vector<1x1x256xf32>
    %13 = math.log %7 : vector<1x1x256xf32>
    %14 = arith.addf %2, %13 : vector<1x1x256xf32>
    %15 = vector.broadcast %12 : vector<1x1x256xf32> to vector<1x4x256xf32>
    %16 = arith.mulf %5, %15 : vector<1x4x256xf32>
    %17 = vector.broadcast %14 : vector<1x1x256xf32> to vector<1x4x256xf32>
    %18 = arith.subf %17, %0 : vector<1x4x256xf32>
    %19 = arith.mulf %16, %18 : vector<1x4x256xf32>
    %cst_4 = arith.constant 0.72134751 : f32
    %20 = vector.broadcast %cst_4 : f32 to vector<1x4x256xf32>
    %21 = arith.mulf %19, %20 : vector<1x4x256xf32>
    %c0_5 = arith.constant 0 : index
    %c0_6 = arith.constant 0 : index
    %c0_7 = arith.constant 0 : index
    %22 = vector.load %arg3[%c0_5, %c0_6, %c0_7] : memref<1x4x256xf32, #tpu.memory_space<vmem>>, vector<1x4x256xf32>
    tpu.vector_store %arg3[%c0_5, %c0_6, %c0_7], %21 {strides = array<i32>} : memref<1x4x256xf32, #tpu.memory_space<vmem>>, vector<1x4x256xf32>,
    return
  }
  func.func @transform_0(%arg0: i32, %arg1: i32) -> (i32, i32, i32) {
    %c0_i32 = arith.constant 0 : i32
    %c0_i32_0 = arith.constant 0 : i32
    return %arg0, %c0_i32, %arg1 : i32, i32, i32
  }
  func.func @transform_1(%arg0: i32, %arg1: i32) -> (i32, i32, i32) {
    %c0_i32 = arith.constant 0 : i32
    %c0_i32_0 = arith.constant 0 : i32
    return %arg0, %c0_i32, %arg1 : i32, i32, i32
  }
}

</mosaic_0001>

<bundles_post_ra>
// kernel: tpu_custom_call.1
= control target key start
LH: loop header
LB: loop body
LE: loop exit
PB: predicated region body
PF: predicated region fallthrough
CT: control target
= control target key end

     0   :  { %6 = vsyncpa [#allocation3], 0  ;;  %s721_s0 = inlined_call_operand.hbm [shape: f32[2,4,256], index: 0, kind: input, shape index: {}]   ;;  %s722_s1 = inlined_call_operand.hbm [shape: f32[2,4,256], index: 1, kind: output, shape index: {}]  }
   0x1   :  { %8 = vsyncpa [#allocation3 + $0x1], 0 }
   0x2   :  { %9 = vsyncpa [#allocation4], 0 }
   0x3   :  { %11 = vsyncpa [#allocation4 + $0x1], 0  ;;  %s541_s6 = smov 0   ;;  %s543_s7 = smov 0  }
   0x4   :  { %s545_s8 = smov 0   ;;  %s547_s9 = smov 0  }
   0x5   :  { %s549_s10 = smov 0   ;;  %s551_s11 = smov 0  }
   0x6 LB: > { %s325_s12 = sadd.s32 4294967295, %s527_s11   ;;  %s326_s13 = sadd.s32 4294967294, %s527_s11   ;;  %s527_s11 = sphi %s551_s11, %s17_s11   ;;  %s523_s10 = sphi %s549_s10, %s738_s10   ;;  %s519_s9 = sphi %s547_s9, %s737_s9   ;;  %s515_s8 = sphi %s545_s8, %s736_s8   ;;  %s511_s7 = sphi %s543_s7, %s735_s7   ;;  %s507_s6 = sphi %s541_s6, %s734_s6  }
   0x7   : > { %s29_s14 = sadd.s32 1, %s523_s10  ;;  %s38_s15 = sadd.s32 1, %s515_s8 }
   0x8   : > { %p31_p0 = scmp.ge.s32.totalorder %s29_s14, 2  ;;  %p45_p1 = scmp.ne.s32.totalorder %s515_s8, %s511_s7 }
   0x9   : > { %p46_p2 = scmp.eq.s32.totalorder %s527_s11, 0  ;;  %p51_p3 = scmp.ne.s32.totalorder %s511_s7, %s507_s6 }
   0xa   : > { %s740_s14 = smov (%p31_p0, %s29_s14), 0  ;;  %p52_p5 = scmp.eq.s32.totalorder %s325_s12, 0 }
   0xb   : > { %p582_p4 = por %p46_p2, %p45_p1  ;;  %s33_s17 = ssub.s32 %s523_s10, %s740_s14 }
   0xc   : > { %p77_p6 = scmp.eq.s32.totalorder %s325_s12, 1  ;;  %p36_p7 = scmp.eq.s32.totalorder %s33_s17, 0 }
   0xd   : > { %p588_p8 = por %p52_p5, %p51_p3  ;;  %p83_p10 = scmp.eq.s32.totalorder %s326_s13, 1 }
   0xe   : > { %p592_p9 = por %p77_p6, %p45_p1  ;;  %p354_p13 = scmp.lt.s32.totalorder %s527_s11, 2 }
   0xf   : > { %s597_s20 = scalar_select %p36_p7, %s515_s8, %s38_s15  }
  0x10   : > { %s726_s19 = scalar_select %p592_p9, 1, 0 }
  0x11   : > { %p599_p11 = por %p83_p10, %p51_p3  ;;  %s103_s22 = sand.u32 1, %s515_s8  }
  0x12   : > { %s329_s23 = sshll.u32 %s103_s22, 3  ;;  %s340_s24 = sshll.u32 %s523_s10, 7 }
  0x13   : > { %s727_s21 = scalar_select %p599_p11, 1, 0 }
  0x14   : > { %s610_s27 = scalar_lea.hbm %s721_s0, %s340_s24  ;;  %s107_s28 = scalar_lea.vmem [#allocation2], %s329_s23 }
  0x15   : > { %s117_s29 = sshll.u32 %s107_s28, 4  ;;  %p616_p0 = pnand %p354_p13, %p582_p4  ;;  %s612_s29 = int_to_ptr.vmem [resolvable:$true] %s117_s29 }
  0x16   : > { %s104_s2 = scalar_lea.sflag [#allocation3], %s103_s22  ;;  %s415_s3 = scalar_lea.hbm %s610_s27, 128 }
  0x17   : > { %p416_p3 = scmp.ne.s32.totalorder %s610_s27, %s415_s3  ;;  %p417_p5 = pneg %p616_p0 }
  0x18   : > { %s420_s12 = scalar_lea.hbm %s721_s0, 256  ;;  %p421_p4 = scmp.lt.u32.totalorder %s610_s27, %s721_s0 }
  0x19   : > { %p418_p6 = pnand %p417_p5, %p416_p3  ;;  %p422_p10 = scmp.lt.u32.totalorder %s420_s12, %s415_s3 }
  0x1a   : > { %p424_p12 = scmp.lt.u32.totalorder %s415_s3, %s610_s27 }
  0x1b   : > { %p419_p7 = pneg %p418_p6  ;;  %p423_p13 = por %p422_p10, %p421_p4 }
  0x1d   : > { %p425_p1 = por %p424_p12, %p423_p13 }
  0x1f   : > { %p426_p2 = pnand %p425_p1, %p419_p7 }
  0x21   : > { %429 = shalt.err (!%p426_p2)
}
  0x22   : > { %s430_s16 = scalar_lea.vmem %s612_s29, 128  ;;  %s529_s17 = smov [#allocation2]  }
  0x23   : > { %p431_p3 = scmp.ne.s32.totalorder %s612_s29, %s430_s16  ;;  %s435_s22 = sshll.u32 %s529_s17, 4  ;;  %s436_s22 = int_to_ptr.vmem [resolvable:$false] %s435_s22 }
  0x24   : > { %s437_s23 = scalar_lea.vmem %s436_s22, 256  ;;  %p438_p9 = scmp.lt.s32.totalorder %s612_s29, %s436_s22 }
  0x25   : > { %p433_p6 = pnand %p431_p3, %p417_p5  ;;  %p439_p4 = scmp.lt.s32.totalorder %s437_s23, %s430_s16 }
  0x27   : > { %p434_p11 = pneg %p433_p6  ;;  %p440_p10 = por %p439_p4, %p438_p9 }
  0x29   : > { %p441_p12 = pnand %p440_p10, %p434_p11 }
  0x2b   : > { %444 = shalt.err (!%p441_p12)
}
  0x2c   : > { %349 = dma.hbm_to_vmem [thread:$0]  (!%p616_p0), %s610_s27, 128, %s612_s29, %s104_s2  }
  0x2d   : > { %p729_p1 = scmp.lt.s32.totalorder %s527_s11, 3  ;;  %p730_p2 = scmp.ge.s32.totalorder %s527_s11, 1 }
  0x2f   : > { %p123_p5 = pnand %p730_p2, %p729_p1 }
  0x30   : > { %s652_s24 = sand.u32 (!%p123_p5), 1, %s511_s7  }
  0x31   : > { %126 = sbr.rel (%p123_p5) target bundleno = 144 (0x90), region = 24  ;;  %s333_s25 = sshll.u32 (!%p123_p5), %s652_s24, 3 }
  0x32   : > { %s129_s26 = scalar_lea.sflag (!%p123_p5), [#allocation3], %s652_s24  ;;  %s132_s28 = scalar_lea.vmem (!%p123_p5), [#allocation2], %s333_s25 }
  0x38   : > { %498 = dma.done.wait (%p588_p8), %s129_s26, 128  }
  0x39   : > { %500 = vsyncadd (%p588_p8), %s129_s26, 4294967168  ;;  %vm157_vm0 = vcmask 1043456   ;;  %v153_v0 = vld [vmem:[%s132_s28] sm:$0xff]  ;;  %s150_s18 = scalar_lea.vmem [#allocation5], %s333_s25  ;;  %s341_s29 = sshll.u32 %s519_s9, 7 }
  0x3a   : > { %v155_v1 = vcombine.high %v153_v0, %v153_v0  ;;  %v158_v2 = vsel %vm157_vm0, %v153_v0, -inf  ;;  %s241_s27 = sshll.u32 %s150_s18, 4  ;;  %s674_s3 = scalar_lea.hbm %s722_s1, %s341_s29  ;;  %s669_s27 = int_to_ptr.vmem [resolvable:$true] %s241_s27 }
  0x3b   : > { %v159_v3 = vrot.slane %v158_v2, 4  ;;  %s225_s4 = scalar_lea.sflag [#allocation4], %s652_s24  ;;  %s445_s5 = scalar_lea.vmem %s669_s27, 128 }
  0x3c   : > { %v165_v4 = vsel %vm157_vm0, %v155_v1, -inf  ;;  %p446_p8 = scmp.ne.s32.totalorder %s669_s27, %s445_s5  ;;  %p731_p9 = scmp.ne.s32.totalorder %s726_s19, 0 }
  0x3d   : > { %v160_v5 = vmax.f32 %v158_v2, %v159_v3  ;;  %v166_v6 = vrot.slane %v165_v4, 4  ;;  %s530_s9 = smov [#allocation5]  }
  0x3e   : > { %p447_p11 = pnand %p446_p8, %p731_p9  ;;  %s449_s12 = sshll.u32 %s530_s9, 4  ;;  %s450_s12 = int_to_ptr.vmem [resolvable:$false] %s449_s12 }
  0x3f   : > { %v161_v7 = vrot.slane %v160_v5, 2  ;;  %v167_v8 = vmax.f32 %v165_v4, %v166_v6  ;;  %s451_s13 = scalar_lea.vmem %s450_s12, 256  ;;  %p452_p7 = scmp.lt.s32.totalorder %s669_s27, %s450_s12 }
  0x40   : > { %p448_p0 = pneg %p447_p11  ;;  %p453_p13 = scmp.lt.s32.totalorder %s451_s13, %s445_s5 }
  0x41   : > { %v162_v9 = vmax.f32 %v160_v5, %v161_v7  ;;  %v168_v10 = vrot.slane %v167_v8, 2 }
  0x42   : > { %p454_p3 = por %p453_p13, %p452_p7 }
  0x43   : > { %v163_v11 = vrot.slane %v162_v9, 1  ;;  %v169_v12 = vmax.f32 %v167_v8, %v168_v10 }
  0x44   : > { %p455_p6 = pnand %p454_p3, %p448_p0 }
  0x45   : > { %v164_v13 = vmax.f32 %v162_v9, %v163_v11  ;;  %v170_v14 = vrot.slane %v169_v12, 1 }
  0x47   : > { %v171_v15 = vmax.f32 %v169_v12, %v170_v14 }
  0x49   : > { %v174_v16 = vcombine.low %v164_v13, %v171_v15 }
  0x4b   : > { %v176_v17 = vsub.f32 %v153_v0, %v174_v16 }
  0x4d   : > { %v177_v18 = vmul.f32 1.442695, %v176_v17 }
  0x4f   : > { %405 = vpow2.f32 %v177_v18 }
  0x59   : > { %v406_v19 = vpop.eup %405 }
  0x5a   : > { %v180_v20 = vcombine.high %v406_v19, %v406_v19  ;;  %v182_v21 = vsel %vm157_vm0, %v406_v19, 0.0 }
  0x5b   : > { %v183_v22 = vrot.slane %v182_v21, 4 }
  0x5c   : > { %v189_v23 = vsel %vm157_vm0, %v180_v20, 0.0 }
  0x5d   : > { %v184_v24 = vadd.f32 %v183_v22, %v182_v21  ;;  %v190_v25 = vrot.slane %v189_v23, 4 }
  0x5f   : > { %v185_v26 = vrot.slane %v184_v24, 2  ;;  %v191_v27 = vadd.f32 %v190_v25, %v189_v23 }
  0x61   : > { %v186_v28 = vadd.f32 %v185_v26, %v184_v24  ;;  %v192_v29 = vrot.slane %v191_v27, 2 }
  0x63   : > { %v187_v30 = vrot.slane %v186_v28, 1  ;;  %v193_v31 = vadd.f32 %v192_v29, %v191_v27 }
  0x65   : > { %v188_v32 = vadd.f32 %v187_v30, %v186_v28  ;;  %v194_v33 = vrot.slane %v193_v31, 1 }
  0x67   : > { %v195_v34 = vadd.f32 %v194_v33, %v193_v31  ;;  %407 = vrcp.f32 %v188_v32 }
  0x68   : > { %409 = vlog2.f32 %v188_v32 }
  0x69   : > { %411 = vrcp.f32 %v195_v34 }
  0x6a   : > { %413 = vlog2.f32 %v195_v34 }
  0x71   : > { %v408_v35 = vpop.eup %407 }
  0x72   : > { %v410_v36 = vpop.eup %409  ;;  %v198_v37 = vmul.f32 %v408_v35, %v188_v32 }
  0x73   : > { %v412_v38 = vpop.eup %411  ;;  %v205_v39 = vmul.f32 0.6931472, %v410_v36 }
  0x74   : > { %v414_v40 = vpop.eup %413  ;;  %v199_v41 = vmul.f32 %v412_v38, %v195_v34  ;;  %v200_v42 = vsub.f32 2.0, %v198_v37 }
  0x75   : > { %v207_v43 = vmul.f32 0.6931472, %v414_v40  ;;  %v208_v44 = vadd.f32 %v205_v39, %v164_v13 }
  0x76   : > { %v201_v45 = vsub.f32 2.0, %v199_v41  ;;  %v202_v46 = vmul.f32 %v408_v35, %v200_v42 }
  0x77   : > { %v209_v47 = vadd.f32 %v207_v43, %v171_v15  ;;  %v215_v48 = vsub.f32 %v208_v44, %v153_v0 }
  0x78   : > { %v203_v49 = vmul.f32 %v412_v38, %v201_v45 }
  0x79   : > { %v216_v50 = vsub.f32 %v209_v47, %v155_v1 }
  0x7a   : > { %v212_v51 = vcombine.low %v202_v46, %v203_v49 }
  0x7b   : > { %v219_v52 = vcombine.low %v215_v48, %v216_v50 }
  0x7c   : > { %v214_v53 = vmul.f32 %v406_v19, %v212_v51 }
  0x7e   : > { %v221_v54 = vmul.f32 %v219_v52, %v214_v53 }
  0x80   : > { %v222_v55 = vmul.f32 0.7213475, %v221_v54 }
  0x82   : > { %223 = vst [vmem:[%s150_s18] sm:$0xff] %v222_v55 }
  0x83   : > { %458 = shalt.err (!%p455_p6)
}
  0x84   : > { %s459_s15 = scalar_lea.hbm %s674_s3, 128  ;;  %s463_s22 = scalar_lea.hbm %s722_s1, 256 }
  0x85   : > { %p460_p4 = scmp.ne.s32.totalorder %s674_s3, %s459_s15  ;;  %p464_p1 = scmp.lt.u32.totalorder %s674_s3, %s722_s1 }
  0x86   : > { %p465_p2 = scmp.lt.u32.totalorder %s463_s22, %s459_s15  ;;  %p467_p8 = scmp.lt.u32.totalorder %s459_s15, %s674_s3 }
  0x87   : > { %p461_p10 = pnand %p460_p4, %p731_p9 }
  0x88   : > { %p466_p5 = por %p465_p2, %p464_p1 }
  0x89   : > { %p462_p12 = pneg %p461_p10 }
  0x8a   : > { %p468_p11 = por %p467_p8, %p466_p5 }
  0x8c   : > { %p469_p0 = pnand %p468_p11, %p462_p12 }
  0x8e   : > { %472 = shalt.err (!%p469_p0)
}
  0x8f   : > { %344 = dma.vmem_to_hbm [thread:$0]  (%p731_p9), %s669_s27, 128, %s674_s3, %s225_s4  }
  0x90 PF: > { %s253_s25 = sand.u32 1, %s507_s6   ;;  %p732_p7 = scmp.ne.s32.totalorder %s727_s21, 0 }
  0x91   : > { %p733_p13 = scmp.ge.s32.totalorder %s527_s11, 2  ;;  %s254_s26 = scalar_lea.sflag [#allocation4], %s253_s25 }
  0x93   : > { %p351_p3 = pnand %p733_p13, %p732_p7 }
  0x95   : > { %502 = dma.done.wait (!%p351_p3), %s254_s26, 128  }
  0x96   : > { %504 = vsyncadd (!%p351_p3), %s254_s26, 4294967168  ;;  %s17_s11 = sadd.s32 1, %s527_s11   ;;  %s734_s6 = smov %s511_s7 }
  0x97   : > { %p14_p6 = scmp.ge.s32.totalorder %s17_s11, 4   ;;  %s735_s7 = smov %s515_s8 }
  0x98   : > { %s736_s8 = smov %s597_s20  ;;  %s737_s9 = smov %s523_s10 }
  0x99   : > { %s738_s10 = smov %s740_s14  ;;  %16 = sbr.rel (!%p14_p6) target bundleno = 6 (0x6), region = 69 }
  0xa0   :  { %259 = vsyncpa [#allocation3], 1 }
  0xa1   :  { %261 = vsyncpa [#allocation3 + $0x1], 1 }
  0xa2   :  { %262 = vsyncpa [#allocation4], 1 }
  0xa3   :  { %264 = vsyncpa [#allocation4 + $0x1], 1 }

</bundles_post_ra>
